<compile_context>
chip_gen: v5e
topology: v5e:2x2
jax: 0.10.0
libtpu: 0.0.40
codegen_flags: <defaults>
</compile_context>

<pallas_src>
import math
from functools import partial

import numpy as np
import jax
import jax.numpy as jnp
from jax import lax
from jax.experimental import pallas as pl
from jax.experimental.pallas import tpu as pltpu


_LOG_LO = math.log(1e-4)
_LOG_HI = math.log(1.0 - 1e-4)
_PAD_GT = 2.0          # sentinel: gt==2 -> neither pos (gt==1) nor neg (gt<1)
_LANES = 128


# ------------------------------ math helpers ----------------------------------

def _smooth_l1(d):
    # torch.nn.functional.smooth_l1_loss element (beta = 1.0)
    ad = jnp.abs(d)
    return jnp.where(ad < 1.0, 0.5 * d * d, ad - 0.5)


def _focal_terms(x, gt):
    # CenterNet focal-loss terms with clamp(sigmoid(x), 1e-4, 1-1e-4) semantics,
    # using one exp + one log per element:
    #   e = exp(-|x|);  sigmoid(x) = where(x>=0, 1, e) / (1+e)
    #   log(sigmoid(x)) = min(x,0) - log(1+e);   log(1-sigmoid(x)) = log(sigmoid)-x
    # log is monotone, so clamping in log space == log of the clamped probability.
    e = jnp.exp(-jnp.abs(x))
    inv = 1.0 / (1.0 + e)
    p = jnp.clip(jnp.where(x >= 0.0, inv, e * inv), 1e-4, 1.0 - 1e-4)
    lp = jnp.minimum(x, 0.0) - jnp.log(1.0 + e)
    log_p = jnp.clip(lp, _LOG_LO, _LOG_HI)
    log_1mp = jnp.clip(lp - x, _LOG_LO, _LOG_HI)

    pos = (gt == 1.0).astype(jnp.float32)
    neg = (gt < 1.0).astype(jnp.float32)          # sentinel gt=2 -> neither branch
    neg_w = jnp.square(jnp.square(1.0 - gt))      # (1-gt)^4
    pos_loss = log_p * jnp.square(1.0 - p) * pos
    neg_loss = log_1mp * jnp.square(p) * neg_w * neg
    return pos_loss, neg_loss, pos


def transpose_and_gather_feat(feat, ind):
    # feat: [B, C, H, W], ind: [B, n]  ->  [B, n, C]   (plain-JAX indexing glue)
    B, C, H, W = feat.shape
    f = jnp.transpose(feat, (0, 2, 3, 1)).reshape(B, H * W, C)
    idx = jnp.broadcast_to(ind[:, :, None].astype(jnp.int32), (B, ind.shape[1], C))
    return jnp.take_along_axis(f, idx, axis=1)


# --------------------- kernel 1: fused head + act focal -----------------------

def _head_act_focal_kernel(w_ref, b_ref, x_ref, gt_ref, awh_ref, part_ref,
                           *, cin, cout):
    x = x_ref[...]                                 # (cin, TR, 128) f32

    # channel 0 = act_hm logits: computed and consumed in VMEM, never hits HBM
    act = x[0] * w_ref[0] + b_ref[0]
    for ci in range(1, cin):
        act = act + x[ci] * w_ref[ci * cout]

    # channels 1..cout-1 = awh map -> HBM (needed by the XLA gather)
    for co in range(1, cout):
        y = x[0] * w_ref[co] + b_ref[co]
        for ci in range(1, cin):
            y = y + x[ci] * w_ref[ci * cout + co]
        awh_ref[co - 1] = y

    # focal partial sums: reduce sublanes only, keep the lane axis for XLA
    pos_l, neg_l, pos = _focal_terms(act, gt_ref[...])
    part_ref[0] = jnp.concatenate(
        [jnp.sum(pos_l, axis=0, keepdims=True),
         jnp.sum(neg_l, axis=0, keepdims=True),
         jnp.sum(pos, axis=0, keepdims=True)], axis=0)          # (3, 128)


def head_act_focal(x_pad, gt_pad, w, b, *, block_rows=8):
    """x_pad: (Cin, R_pad, 128); gt_pad: (R_pad, 128); w: (Cin, Cout); b: (Cout,)."""
    cin, r_pad, _ = x_pad.shape
    cout = w.shape[1]
    nb = r_pad // block_rows
    kernel = partial(_head_act_focal_kernel, cin=cin, cout=cout)
    grid_spec = pltpu.PrefetchScalarGridSpec(
        num_scalar_prefetch=0,
        grid=(nb,),
        in_specs=[
            pl.BlockSpec(memory_space=pltpu.MemorySpace.SMEM),        # head weights
            pl.BlockSpec(memory_space=pltpu.MemorySpace.SMEM),        # head bias
            pl.BlockSpec((cin, block_rows, _LANES), lambda i: (0, i, 0)),
            pl.BlockSpec((block_rows, _LANES), lambda i: (i, 0)),
        ],
        out_specs=[
            pl.BlockSpec((cout - 1, block_rows, _LANES), lambda i: (0, i, 0)),
            pl.BlockSpec((1, 3, _LANES), lambda i: (i, 0, 0)),
        ],
    )
    return pl.pallas_call(
        kernel,
        out_shape=(jax.ShapeDtypeStruct((cout - 1, r_pad, _LANES), jnp.float32),
                   jax.ShapeDtypeStruct((nb, 3, _LANES), jnp.float32)),
        grid_spec=grid_spec,
        # TODO(synk): at production heatmap sizes raise block_rows so per-input
        # tiles are ~2-4 MiB (double-buffered pairs stay inside v7x's 32/64 MiB).
        compiler_params=pltpu.CompilerParams(
            dimension_semantics=("parallel",),
            vmem_limit_bytes=32 * 1024 * 1024),
    )(w.reshape(-1), b, x_pad, gt_pad)


# ------------- kernel 2: cp focal + packed IndL1 + py/shape losses ------------

def _cp_py_ind_kernel(cp_l_ref, cp_g_ref, py_ref, gt_ref, pack_ref, o_ref,
                      *, n_preds, rows_per_pred):
    # ---- cp_hm focal loss (sentinel-padded gt, see _PAD_GT) ----
    pos_l, neg_l, pos = _focal_terms(cp_l_ref[...], cp_g_ref[...])
    o_ref[0] = jnp.sum(pos_l)
    o_ref[1] = jnp.sum(neg_l)
    o_ref[2] = jnp.sum(pos)

    # ---- IndL1 (smooth_l1) losses; six tiny tensors packed into one buffer ----
    # rows: [awh_o, awh_t, awh_w, cpw_o, cpw_t, cpw_w]; zero-weight padding is
    # exact (o*w - t*w == 0 there and w adds 0 to the denominator).
    pk = pack_ref[...]                              # (6, L)
    d_awh = pk[0:1] * pk[2:3] - pk[1:2] * pk[2:3]
    o_ref[3] = jnp.sum(_smooth_l1(d_awh))
    o_ref[4] = jnp.sum(pk[2:3])                     # == weight.sum() * C
    d_cpw = pk[3:4] * pk[5:6] - pk[4:5] * pk[5:6]
    o_ref[5] = jnp.sum(_smooth_l1(d_cpw))
    o_ref[6] = jnp.sum(pk[5:6])

    # ---- py / shape losses with 0.85**k decay folded in as per-row weights ----
    py = py_ref[...]                                # (n_preds*rpp, n_points)
    gt = gt_ref[...]                                # (rpp, n_points), passed ONCE
    n_pts = py.shape[-1]
    d = py - jnp.concatenate([gt] * n_preds, axis=0)

    row = lax.broadcasted_iota(jnp.int32, d.shape, 0)
    w = jnp.full(d.shape, 0.85 ** (n_preds - 1), jnp.float32)
    for k in range(1, n_preds):                     # pred i gets 0.85**(n-1-i)
        w = jnp.where(row >= k * rows_per_pred, 0.85 ** (n_preds - 1 - k), w)

    # reduce sl1_py before materializing d_shape (keeps live vreg slabs low)
    o_ref[7] = jnp.sum(_smooth_l1(d) * w)
    # cat((x[:,1:], x[:,:1]), 1) over the points axis == roll-left-by-1; the
    # summed even penalty is also roll-direction invariant, so one XLU roll.
    d_shape = pltpu.roll(d, n_pts - 1, axis=1) - d
    o_ref[8] = jnp.sum(_smooth_l1(d_shape) * w)


def cp_py_ind_losses(cp_l2, cp_g2, py2, gt2, pack, *, n_preds, rows_per_pred):
    kernel = partial(_cp_py_ind_kernel, n_preds=n_preds,
                     rows_per_pred=rows_per_pred)
    return pl.pallas_call(
        kernel,
        out_shape=jax.ShapeDtypeStruct((9,), jnp.float32),
        out_specs=pl.BlockSpec(memory_space=pltpu.MemorySpace.SMEM),
    )(cp_l2, cp_g2, py2, gt2, pack)


# --------------------------- end-to-end (jitted) ------------------------------

@partial(jax.jit, static_argnames=("block_rows",))
def network_wrapper_losses(inp, head_w, head_b,
                           act_hm_gt, awh_gt, act_ind, act_01,
                           cp_hm_sel, cp_wh_sel, cp_ind_sel, cp_01_sel,
                           out_cp_hm, out_cp_wh, py_pred, i_gt_py,
                           block_rows=8):
    B, Cin, H, W = inp.shape
    cout = head_w.shape[1]
    n_pix = B * H * W

    # ---- lane-dense, sentinel-padded inputs for kernel 1 ----
    rows = -(-n_pix // _LANES)
    r_pad = -(-rows // block_rows) * block_rows
    pad = r_pad * _LANES - n_pix
    x_flat = jnp.transpose(inp, (1, 0, 2, 3)).reshape(Cin, n_pix)
    x_pad = jnp.pad(x_flat, ((0, 0), (0, pad))).reshape(Cin, r_pad, _LANES)
    gt_pad = jnp.pad(act_hm_gt.reshape(-1), (0, pad),
                     constant_values=_PAD_GT).reshape(r_pad, _LANES)

    awh_map, act_part = head_act_focal(x_pad, gt_pad, head_w, head_b,
                                       block_rows=block_rows)
    act_sums = jnp.sum(act_part, axis=(0, 2))       # [pos_loss, neg_loss, num_pos]

    # ---- XLA indexing glue: tiny dynamic gathers ----
    n_max = act_ind.shape[1]
    awh_flat = awh_map.reshape(cout - 1, r_pad * _LANES)[:, :n_pix]
    flat_idx = (jnp.arange(B)[:, None] * (H * W) + act_ind).reshape(-1)
    awh_gathered = awh_flat[:, flat_idx].T.reshape(B, n_max, cout - 1)
    cpw_gathered = transpose_and_gather_feat(out_cp_wh, cp_ind_sel)

    # ---- pack the six tiny IndL1 tensors into ONE lane-padded buffer ----
    awh_o = awh_gathered.reshape(-1)
    awh_t = awh_gt.reshape(-1)
    awh_w = jnp.broadcast_to(act_01[..., None], awh_gathered.shape).reshape(-1)
    cpw_o = cpw_gathered.reshape(-1)
    cpw_t = cp_wh_sel.reshape(-1)
    cpw_w = jnp.broadcast_to(cp_01_sel[..., None], cpw_gathered.shape).reshape(-1)
    L = _LANES * max(-(-awh_o.shape[0] // _LANES), -(-cpw_o.shape[0] // _LANES))

    def _padL(v):
        return jnp.pad(v, (0, L - v.shape[0]))

    pack = jnp.stack([_padL(awh_o), _padL(awh_t), _padL(awh_w),
                      _padL(cpw_o), _padL(cpw_t), _padL(cpw_w)], axis=0)

    # ---- cp heatmap focal inputs (lane-dense, sentinel-padded) ----
    cp_l_flat = out_cp_hm.reshape(-1)
    cp_g_flat = cp_hm_sel.reshape(-1)
    n_cp = cp_l_flat.shape[0]
    cp_rows = -(-n_cp // _LANES)
    cp_pad = cp_rows * _LANES - n_cp
    cp_l2 = jnp.pad(cp_l_flat, (0, cp_pad)).reshape(cp_rows, _LANES)
    cp_g2 = jnp.pad(cp_g_flat, (0, cp_pad),
                    constant_values=_PAD_GT).reshape(cp_rows, _LANES)

    # ---- polygons: (poly, xy) on sublanes, points on lanes; gt passed once ----
    n_preds = len(py_pred)
    n_poly, n_points, _ = i_gt_py.shape
    rows_per_pred = n_poly * 2
    py2 = jnp.stack(list(py_pred), axis=0)                       # (P, poly, pts, 2)
    py2 = jnp.transpose(py2, (0, 1, 3, 2)).reshape(n_preds * rows_per_pred, n_points)
    gt2 = jnp.transpose(i_gt_py, (0, 2, 1)).reshape(rows_per_pred, n_points)

    s = cp_py_ind_losses(cp_l2, cp_g2, py2, gt2, pack,
                         n_preds=n_preds, rows_per_pred=rows_per_pred)

    # ---- final scalar combine (one tiny XLA fusion) ----
    def focal_final(pos_s, neg_s, num_pos):
        # safe denominator avoids NaN grads through the untaken where branch
        return jnp.where(num_pos == 0.0, -neg_s,
                         -(pos_s + neg_s) / jnp.maximum(num_pos, 1.0))

    act_loss = focal_final(act_sums[0], act_sums[1], act_sums[2])
    cp_loss = focal_final(s[0], s[1], s[2])
    awh_loss = s[3] / (s[4] + 1e-4)
    cp_wh_loss = s[5] / (s[6] + 1e-4)
    n_elem = n_poly * n_points * 2
    # reference: sum_i w_i * mean_i(sl1) / n_preds  ==  (sum_i w_i*sum_i)/n_elem/n_preds
    py_loss = s[7] / n_elem / n_preds
    shape_loss = s[8] / n_elem / n_preds

    loss = (act_loss + 0.1 * awh_loss + cp_loss + 0.1 * cp_wh_loss
            + py_loss + shape_loss)
    scalar_stats = {'act_loss': act_loss, 'awh_loss': awh_loss,
                    'cp_loss': cp_loss, 'cp_wh_loss': cp_wh_loss,
                    'py_loss': py_loss, 'shape_loss': shape_loss, 'loss': loss}
    return loss, scalar_stats


# --------------------------------- main ---------------------------------------

if __name__ == "__main__":
    key = jax.random.PRNGKey(0)
    ks = jax.random.split(key, 16)

    B, Cin, H, W = 2, 3, 32, 32           # 2048 pixels -> 16 rows -> 2 grid blocks
    n_max, m_cp, ro = 4, 8, 8
    n_points, n_preds, n_poly = 128, 3, 4

    inp = jax.random.normal(ks[0], (B, Cin, H, W), jnp.float32)

    # deterministic "net" parameters: 1x1 conv head Cin -> (1 act_hm + 2 awh)
    head_w = jax.random.normal(ks[1], (Cin, 3), jnp.float32) * 0.1
    head_b = jnp.zeros((3,), jnp.float32)

    # ---- batch (supervision) ----
    act_hm_gt = jax.random.uniform(ks[2], (B, 1, H, W), jnp.float32, 0.0, 0.95)
    act_hm_gt = act_hm_gt.at[:, 0, 4, 4].set(1.0)            # exact positives
    awh_gt = jax.random.uniform(ks[3], (B, n_max, 2), jnp.float32, 0.0, 4.0)
    act_ind = jax.random.randint(ks[4], (B, n_max), 0, H * W)
    act_01_np = np.array([[1, 1, 0, 1], [1, 0, 1, 1]], dtype=np.uint8)
    act_01 = jnp.asarray(act_01_np, jnp.float32)

    cp_hm_gt = jax.random.uniform(ks[5], (B, n_max, 1, ro, ro),
                                  jnp.float32, 0.0, 0.95)
    cp_hm_gt = cp_hm_gt.at[:, :, 0, 2, 2].set(1.0)
    cp_wh_gt = jax.random.uniform(ks[6], (B, n_max, m_cp, 2),
                                  jnp.float32, 0.0, 3.0)
    cp_ind = jax.random.randint(ks[7], (B, n_max, m_cp), 0, ro * ro)
    cp_01 = (jax.random.uniform(ks[8], (B, n_max, m_cp)) > 0.3).astype(jnp.float32)

    # `batch[k][act_01.byte()]` boolean-mask selection: dynamic shape -> host
    mask = act_01_np.astype(bool)
    n_sel = int(mask.sum())
    cp_hm_sel = jnp.asarray(np.asarray(cp_hm_gt)[mask])       # [n_sel,1,ro,ro]
    cp_wh_sel = jnp.asarray(np.asarray(cp_wh_gt)[mask])       # [n_sel,m_cp,2]
    cp_ind_sel = jnp.asarray(np.asarray(cp_ind)[mask])        # [n_sel,m_cp]
    cp_01_sel = jnp.asarray(np.asarray(cp_01)[mask])          # [n_sel,m_cp]

    # TODO(synk): the real cp / snake-GCN branches belong to the black-box `net`;
    # stand-in outputs of the correct shapes exercise the wrapper's loss math.
    out_cp_hm = jax.random.normal(ks[9], (n_sel, 1, ro, ro), jnp.float32)
    out_cp_wh = jax.random.normal(ks[10], (n_sel, 2, ro, ro), jnp.float32)
    i_gt_py = jax.random.normal(ks[11], (n_poly, n_points, 2), jnp.float32) * 4.0
    py_pred = tuple(i_gt_py + 0.5 * jax.random.normal(
        ks[12 + i], (n_poly, n_points, 2), jnp.float32) for i in range(n_preds))

    loss, scalar_stats = network_wrapper_losses(
        inp, head_w, head_b,
        act_hm_gt, awh_gt, act_ind, act_01,
        cp_hm_sel, cp_wh_sel, cp_ind_sel, cp_01_sel,
        out_cp_hm, out_cp_wh, py_pred, i_gt_py)
    image_stats = {}

    jax.block_until_ready(loss)
    print("KERNEL_OK")
</pallas_src>

<mosaic_0001>
module attributes {stable_mosaic.version = 11 : i64} {
  func.func @_head_act_focal_kernel(%arg0: i32, %arg1: memref<9xf32, #tpu.memory_space<smem>>, %arg2: memref<3xf32, #tpu.memory_space<smem>>, %arg3: memref<3x8x128xf32, #tpu.memory_space<vmem>>, %arg4: memref<8x128xf32, #tpu.memory_space<vmem>>, %arg5: memref<2x8x128xf32, #tpu.memory_space<vmem>>, %arg6: memref<1x3x128xf32, #tpu.memory_space<vmem>>) attributes {dimension_semantics = [#tpu.dimension_semantics<parallel>], iteration_bounds = array<i64: 2>, scalar_prefetch = 0 : i64, scratch_operands = 0 : i64, tpu.core_type = #tpu.core_type<tc>, window_params = [{transform_indices = @transform_0, window_bounds = array<i64: 9>}, {transform_indices = @transform_1, window_bounds = array<i64: 3>}, {transform_indices = @transform_2, window_bounds = array<i64: 3, 8, 128>}, {transform_indices = @transform_3, window_bounds = array<i64: 8, 128>}, {transform_indices = @transform_4, window_bounds = array<i64: 2, 8, 128>}, {transform_indices = @transform_5, window_bounds = array<i64: 1, 3, 128>}]} {
    %c0 = arith.constant 0 : index
    %c0_0 = arith.constant 0 : index
    %c0_1 = arith.constant 0 : index
    %0 = vector.load %arg3[%c0, %c0_0, %c0_1] : memref<3x8x128xf32, #tpu.memory_space<vmem>>, vector<3x8x128xf32>
    %1 = vector.extract_strided_slice %0 {offsets = [0, 0, 0], sizes = [1, 8, 128], strides = [1, 1, 1]} : vector<3x8x128xf32> to vector<1x8x128xf32>
    %2 = vector.shape_cast %1 : vector<1x8x128xf32> to vector<8x128xf32>
    %c0_2 = arith.constant 0 : index
    %3 = memref.load %arg1[%c0_2] : memref<9xf32, #tpu.memory_space<smem>>
    %4 = vector.broadcast %3 : f32 to vector<8x128xf32>
    %5 = arith.mulf %2, %4 : vector<8x128xf32>
    %c0_3 = arith.constant 0 : index
    %6 = memref.load %arg2[%c0_3] : memref<3xf32, #tpu.memory_space<smem>>
    %7 = vector.broadcast %6 : f32 to vector<8x128xf32>
    %8 = arith.addf %5, %7 : vector<8x128xf32>
    %9 = vector.extract_strided_slice %0 {offsets = [1, 0, 0], sizes = [1, 8, 128], strides = [1, 1, 1]} : vector<3x8x128xf32> to vector<1x8x128xf32>
    %10 = vector.shape_cast %9 : vector<1x8x128xf32> to vector<8x128xf32>
    %c3 = arith.constant 3 : index
    %11 = memref.load %arg1[%c3] : memref<9xf32, #tpu.memory_space<smem>>
    %12 = vector.broadcast %11 : f32 to vector<8x128xf32>
    %13 = arith.mulf %10, %12 : vector<8x128xf32>
    %14 = arith.addf %8, %13 : vector<8x128xf32>
    %15 = vector.extract_strided_slice %0 {offsets = [2, 0, 0], sizes = [1, 8, 128], strides = [1, 1, 1]} : vector<3x8x128xf32> to vector<1x8x128xf32>
    %16 = vector.shape_cast %15 : vector<1x8x128xf32> to vector<8x128xf32>
    %c6 = arith.constant 6 : index
    %17 = memref.load %arg1[%c6] : memref<9xf32, #tpu.memory_space<smem>>
    %18 = vector.broadcast %17 : f32 to vector<8x128xf32>
    %19 = arith.mulf %16, %18 : vector<8x128xf32>
    %20 = arith.addf %14, %19 : vector<8x128xf32>
    %21 = vector.extract_strided_slice %0 {offsets = [0, 0, 0], sizes = [1, 8, 128], strides = [1, 1, 1]} : vector<3x8x128xf32> to vector<1x8x128xf32>
    %22 = vector.shape_cast %21 : vector<1x8x128xf32> to vector<8x128xf32>
    %c1 = arith.constant 1 : index
    %23 = memref.load %arg1[%c1] : memref<9xf32, #tpu.memory_space<smem>>
    %24 = vector.broadcast %23 : f32 to vector<8x128xf32>
    %25 = arith.mulf %22, %24 : vector<8x128xf32>
    %c1_4 = arith.constant 1 : index
    %26 = memref.load %arg2[%c1_4] : memref<3xf32, #tpu.memory_space<smem>>
    %27 = vector.broadcast %26 : f32 to vector<8x128xf32>
    %28 = arith.addf %25, %27 : vector<8x128xf32>
    %29 = vector.extract_strided_slice %0 {offsets = [1, 0, 0], sizes = [1, 8, 128], strides = [1, 1, 1]} : vector<3x8x128xf32> to vector<1x8x128xf32>
    %30 = vector.shape_cast %29 : vector<1x8x128xf32> to vector<8x128xf32>
    %c4 = arith.constant 4 : index
    %31 = memref.load %arg1[%c4] : memref<9xf32, #tpu.memory_space<smem>>
    %32 = vector.broadcast %31 : f32 to vector<8x128xf32>
    %33 = arith.mulf %30, %32 : vector<8x128xf32>
    %34 = arith.addf %28, %33 : vector<8x128xf32>
    %35 = vector.extract_strided_slice %0 {offsets = [2, 0, 0], sizes = [1, 8, 128], strides = [1, 1, 1]} : vector<3x8x128xf32> to vector<1x8x128xf32>
    %36 = vector.shape_cast %35 : vector<1x8x128xf32> to vector<8x128xf32>
    %c7 = arith.constant 7 : index
    %37 = memref.load %arg1[%c7] : memref<9xf32, #tpu.memory_space<smem>>
    %38 = vector.broadcast %37 : f32 to vector<8x128xf32>
    %39 = arith.mulf %36, %38 : vector<8x128xf32>
    %40 = arith.addf %34, %39 : vector<8x128xf32>
    %c0_5 = arith.constant 0 : index
    %c0_6 = arith.constant 0 : index
    %c0_7 = arith.constant 0 : index
    %41 = vector.load %arg5[%c0_5, %c0_6, %c0_7] : memref<2x8x128xf32, #tpu.memory_space<vmem>>, vector<1x8x128xf32>
    %42 = vector.shape_cast %41 : vector<1x8x128xf32> to vector<8x128xf32>
    %43 = vector.shape_cast %40 : vector<8x128xf32> to vector<1x8x128xf32>
    tpu.vector_store %arg5[%c0_5, %c0_6, %c0_7], %43 {strides = array<i32>} : memref<2x8x128xf32, #tpu.memory_space<vmem>>, vector<1x8x128xf32>,
    %44 = vector.extract_strided_slice %0 {offsets = [0, 0, 0], sizes = [1, 8, 128], strides = [1, 1, 1]} : vector<3x8x128xf32> to vector<1x8x128xf32>
    %45 = vector.shape_cast %44 : vector<1x8x128xf32> to vector<8x128xf32>
    %c2 = arith.constant 2 : index
    %46 = memref.load %arg1[%c2] : memref<9xf32, #tpu.memory_space<smem>>
    %47 = vector.broadcast %46 : f32 to vector<8x128xf32>
    %48 = arith.mulf %45, %47 : vector<8x128xf32>
    %c2_8 = arith.constant 2 : index
    %49 = memref.load %arg2[%c2_8] : memref<3xf32, #tpu.memory_space<smem>>
    %50 = vector.broadcast %49 : f32 to vector<8x128xf32>
    %51 = arith.addf %48, %50 : vector<8x128xf32>
    %52 = vector.extract_strided_slice %0 {offsets = [1, 0, 0], sizes = [1, 8, 128], strides = [1, 1, 1]} : vector<3x8x128xf32> to vector<1x8x128xf32>
    %53 = vector.shape_cast %52 : vector<1x8x128xf32> to vector<8x128xf32>
    %c5 = arith.constant 5 : index
    %54 = memref.load %arg1[%c5] : memref<9xf32, #tpu.memory_space<smem>>
    %55 = vector.broadcast %54 : f32 to vector<8x128xf32>
    %56 = arith.mulf %53, %55 : vector<8x128xf32>
    %57 = arith.addf %51, %56 : vector<8x128xf32>
    %58 = vector.extract_strided_slice %0 {offsets = [2, 0, 0], sizes = [1, 8, 128], strides = [1, 1, 1]} : vector<3x8x128xf32> to vector<1x8x128xf32>
    %59 = vector.shape_cast %58 : vector<1x8x128xf32> to vector<8x128xf32>
    %c8 = arith.constant 8 : index
    %60 = memref.load %arg1[%c8] : memref<9xf32, #tpu.memory_space<smem>>
    %61 = vector.broadcast %60 : f32 to vector<8x128xf32>
    %62 = arith.mulf %59, %61 : vector<8x128xf32>
    %63 = arith.addf %57, %62 : vector<8x128xf32>
    %c1_9 = arith.constant 1 : index
    %c0_10 = arith.constant 0 : index
    %c0_11 = arith.constant 0 : index
    %64 = vector.load %arg5[%c1_9, %c0_10, %c0_11] : memref<2x8x128xf32, #tpu.memory_space<vmem>>, vector<1x8x128xf32>
    %65 = vector.shape_cast %64 : vector<1x8x128xf32> to vector<8x128xf32>
    %66 = vector.shape_cast %63 : vector<8x128xf32> to vector<1x8x128xf32>
    tpu.vector_store %arg5[%c1_9, %c0_10, %c0_11], %66 {strides = array<i32>} : memref<2x8x128xf32, #tpu.memory_space<vmem>>, vector<1x8x128xf32>,
    %c0_12 = arith.constant 0 : index
    %c0_13 = arith.constant 0 : index
    %67 = vector.load %arg4[%c0_12, %c0_13] : memref<8x128xf32, #tpu.memory_space<vmem>>, vector<8x128xf32>
    %68 = math.absf %20 : vector<8x128xf32>
    %cst = arith.constant 0.000000e+00 : f32
    %69 = vector.broadcast %cst : f32 to vector<8x128xf32>
    %70 = arith.subf %69, %68 : vector<8x128xf32>
    %71 = math.exp %70 : vector<8x128xf32>
    %cst_14 = arith.constant 1.000000e+00 : f32
    %72 = vector.broadcast %cst_14 : f32 to vector<8x128xf32>
    %73 = arith.addf %72, %71 : vector<8x128xf32>
    %cst_15 = arith.constant 1.000000e+00 : f32
    %74 = vector.broadcast %cst_15 : f32 to vector<8x128xf32>
    %75 = arith.divf %74, %73 : vector<8x128xf32>
    %cst_16 = arith.constant 0.000000e+00 : f32
    %76 = vector.broadcast %cst_16 : f32 to vector<8x128xf32>
    %77 = arith.cmpf oge, %20, %76 : vector<8x128xf32>
    %78 = arith.mulf %71, %75 : vector<8x128xf32>
    %79 = arith.select %77, %75, %78 : vector<8x128xi1>, vector<8x128xf32>
    %cst_17 = arith.constant 9.99999974E-5 : f32
    %cst_18 = arith.constant 0.999899983 : f32
    %80 = vector.broadcast %cst_17 : f32 to vector<8x128xf32>
    %81 = arith.maximumf %80, %79 : vector<8x128xf32>
    %82 = vector.broadcast %cst_18 : f32 to vector<8x128xf32>
    %83 = arith.minimumf %82, %81 : vector<8x128xf32>
    %cst_19 = arith.constant 0.000000e+00 : f32
    %84 = vector.broadcast %cst_19 : f32 to vector<8x128xf32>
    %85 = arith.minimumf %20, %84 : vector<8x128xf32>
    %cst_20 = arith.constant 1.000000e+00 : f32
    %86 = vector.broadcast %cst_20 : f32 to vector<8x128xf32>
    %87 = arith.addf %86, %71 : vector<8x128xf32>
    %88 = math.log %87 : vector<8x128xf32>
    %89 = arith.subf %85, %88 : vector<8x128xf32>
    %cst_21 = arith.constant -9.21034049 : f32
    %cst_22 = arith.constant -1.000050e-04 : f32
    %90 = vector.broadcast %cst_21 : f32 to vector<8x128xf32>
    %91 = arith.maximumf %90, %89 : vector<8x128xf32>
    %92 = vector.broadcast %cst_22 : f32 to vector<8x128xf32>
    %93 = arith.minimumf %92, %91 : vector<8x128xf32>
    %94 = arith.subf %89, %20 : vector<8x128xf32>
    %cst_23 = arith.constant -9.21034049 : f32
    %cst_24 = arith.constant -1.000050e-04 : f32
    %95 = vector.broadcast %cst_23 : f32 to vector<8x128xf32>
    %96 = arith.maximumf %95, %94 : vector<8x128xf32>
    %97 = vector.broadcast %cst_24 : f32 to vector<8x128xf32>
    %98 = arith.minimumf %97, %96 : vector<8x128xf32>
    %cst_25 = arith.constant 1.000000e+00 : f32
    %99 = vector.broadcast %cst_25 : f32 to vector<8x128xf32>
    %100 = arith.cmpf oeq, %67, %99 : vector<8x128xf32>
    %101 = arith.extui %100 : vector<8x128xi1> to vector<8x128xi32>
    %102 = arith.sitofp %101 : vector<8x128xi32> to vector<8x128xf32>
    %cst_26 = arith.constant 1.000000e+00 : f32
    %103 = vector.broadcast %cst_26 : f32 to vector<8x128xf32>
    %104 = arith.cmpf olt, %67, %103 : vector<8x128xf32>
    %105 = arith.extui %104 : vector<8x128xi1> to vector<8x128xi32>
    %106 = arith.sitofp %105 : vector<8x128xi32> to vector<8x128xf32>
    %cst_27 = arith.constant 1.000000e+00 : f32
    %107 = vector.broadcast %cst_27 : f32 to vector<8x128xf32>
    %108 = arith.subf %107, %67 : vector<8x128xf32>
    %109 = arith.mulf %108, %108 : vector<8x128xf32>
    %110 = arith.mulf %109, %109 : vector<8x128xf32>
    %cst_28 = arith.constant 1.000000e+00 : f32
    %111 = vector.broadcast %cst_28 : f32 to vector<8x128xf32>
    %112 = arith.subf %111, %83 : vector<8x128xf32>
    %113 = arith.mulf %112, %112 : vector<8x128xf32>
    %114 = arith.mulf %93, %113 : vector<8x128xf32>
    %115 = arith.mulf %114, %102 : vector<8x128xf32>
    %116 = arith.mulf %83, %83 : vector<8x128xf32>
    %117 = arith.mulf %98, %116 : vector<8x128xf32>
    %118 = arith.mulf %117, %110 : vector<8x128xf32>
    %119 = arith.mulf %118, %106 : vector<8x128xf32>
    %cst_29 = arith.constant dense<0.000000e+00> : vector<128xf32>
    %120 = vector.multi_reduction <add>, %115, %cst_29 [0] : vector<8x128xf32> to vector<128xf32>
    %121 = vector.shape_cast %120 : vector<128xf32> to vector<1x128xf32>
    %cst_30 = arith.constant dense<0.000000e+00> : vector<128xf32>
    %122 = vector.multi_reduction <add>, %119, %cst_30 [0] : vector<8x128xf32> to vector<128xf32>
    %123 = vector.shape_cast %122 : vector<128xf32> to vector<1x128xf32>
    %cst_31 = arith.constant dense<0.000000e+00> : vector<128xf32>
    %124 = vector.multi_reduction <add>, %102, %cst_31 [0] : vector<8x128xf32> to vector<128xf32>
    %125 = vector.shape_cast %124 : vector<128xf32> to vector<1x128xf32>
    %126 = tpu.concatenate %121, %123, %125 in 0 : vector<1x128xf32>, vector<1x128xf32>, vector<1x128xf32> -> vector<3x128xf32>
    %c0_32 = arith.constant 0 : index
    %c0_33 = arith.constant 0 : index
    %c0_34 = arith.constant 0 : index
    %127 = vector.load %arg6[%c0_32, %c0_33, %c0_34] : memref<1x3x128xf32, #tpu.memory_space<vmem>>, vector<1x3x128xf32>
    %128 = vector.shape_cast %127 : vector<1x3x128xf32> to vector<3x128xf32>
    %129 = vector.shape_cast %126 : vector<3x128xf32> to vector<1x3x128xf32>
    tpu.vector_store %arg6[%c0_32, %c0_33, %c0_34], %129 {strides = array<i32>} : memref<1x3x128xf32, #tpu.memory_space<vmem>>, vector<1x3x128xf32>,
    return
  }
  func.func @transform_0(%arg0: i32) -> i32 {
    %c0_i32 = arith.constant 0 : i32
    %c0_i32_0 = arith.constant 0 : i32
    return %c0_i32 : i32
  }
  func.func @transform_1(%arg0: i32) -> i32 {
    %c0_i32 = arith.constant 0 : i32
    %c0_i32_0 = arith.constant 0 : i32
    return %c0_i32 : i32
  }
  func.func @transform_2(%arg0: i32) -> (i32, i32, i32) {
    %c0_i32 = arith.constant 0 : i32
    %c0_i32_0 = arith.constant 0 : i32
    %c0_i32_1 = arith.constant 0 : i32
    return %c0_i32, %arg0, %c0_i32_0 : i32, i32, i32
  }
  func.func @transform_3(%arg0: i32) -> (i32, i32) {
    %c0_i32 = arith.constant 0 : i32
    %c0_i32_0 = arith.constant 0 : i32
    return %arg0, %c0_i32 : i32, i32
  }
  func.func @transform_4(%arg0: i32) -> (i32, i32, i32) {
    %c0_i32 = arith.constant 0 : i32
    %c0_i32_0 = arith.constant 0 : i32
    %c0_i32_1 = arith.constant 0 : i32
    return %c0_i32, %arg0, %c0_i32_0 : i32, i32, i32
  }
  func.func @transform_5(%arg0: i32) -> (i32, i32, i32) {
    %c0_i32 = arith.constant 0 : i32
    %c0_i32_0 = arith.constant 0 : i32
    %c0_i32_1 = arith.constant 0 : i32
    return %arg0, %c0_i32, %c0_i32_0 : i32, i32, i32
  }
}

module attributes {stable_mosaic.version = 11 : i64} {
  func.func @_cp_py_ind_kernel(%arg0: memref<3x128xf32, #tpu.memory_space<vmem>>, %arg1: memref<3x128xf32, #tpu.memory_space<vmem>>, %arg2: memref<24x128xf32, #tpu.memory_space<vmem>>, %arg3: memref<8x128xf32, #tpu.memory_space<vmem>>, %arg4: memref<6x128xf32, #tpu.memory_space<vmem>>, %arg5: memref<9xf32, #tpu.memory_space<smem>>) attributes {dimension_semantics = [], scalar_prefetch = 0 : i64, scratch_operands = 0 : i64, tpu.core_type = #tpu.core_type<tc>} {
    %c0 = arith.constant 0 : index
    %c0_0 = arith.constant 0 : index
    %0 = vector.load %arg0[%c0, %c0_0] : memref<3x128xf32, #tpu.memory_space<vmem>>, vector<3x128xf32>
    %c0_1 = arith.constant 0 : index
    %c0_2 = arith.constant 0 : index
    %1 = vector.load %arg1[%c0_1, %c0_2] : memref<3x128xf32, #tpu.memory_space<vmem>>, vector<3x128xf32>
    %2 = math.absf %0 : vector<3x128xf32>
    %cst = arith.constant 0.000000e+00 : f32
    %3 = vector.broadcast %cst : f32 to vector<3x128xf32>
    %4 = arith.subf %3, %2 : vector<3x128xf32>
    %5 = math.exp %4 : vector<3x128xf32>
    %cst_3 = arith.constant 1.000000e+00 : f32
    %6 = vector.broadcast %cst_3 : f32 to vector<3x128xf32>
    %7 = arith.addf %6, %5 : vector<3x128xf32>
    %cst_4 = arith.constant 1.000000e+00 : f32
    %8 = vector.broadcast %cst_4 : f32 to vector<3x128xf32>
    %9 = arith.divf %8, %7 : vector<3x128xf32>
    %cst_5 = arith.constant 0.000000e+00 : f32
    %10 = vector.broadcast %cst_5 : f32 to vector<3x128xf32>
    %11 = arith.cmpf oge, %0, %10 : vector<3x128xf32>
    %12 = arith.mulf %5, %9 : vector<3x128xf32>
    %13 = arith.select %11, %9, %12 : vector<3x128xi1>, vector<3x128xf32>
    %cst_6 = arith.constant 9.99999974E-5 : f32
    %cst_7 = arith.constant 0.999899983 : f32
    %14 = vector.broadcast %cst_6 : f32 to vector<3x128xf32>
    %15 = arith.maximumf %14, %13 : vector<3x128xf32>
    %16 = vector.broadcast %cst_7 : f32 to vector<3x128xf32>
    %17 = arith.minimumf %16, %15 : vector<3x128xf32>
    %cst_8 = arith.constant 0.000000e+00 : f32
    %18 = vector.broadcast %cst_8 : f32 to vector<3x128xf32>
    %19 = arith.minimumf %0, %18 : vector<3x128xf32>
    %cst_9 = arith.constant 1.000000e+00 : f32
    %20 = vector.broadcast %cst_9 : f32 to vector<3x128xf32>
    %21 = arith.addf %20, %5 : vector<3x128xf32>
    %22 = math.log %21 : vector<3x128xf32>
    %23 = arith.subf %19, %22 : vector<3x128xf32>
    %cst_10 = arith.constant -9.21034049 : f32
    %cst_11 = arith.constant -1.000050e-04 : f32
    %24 = vector.broadcast %cst_10 : f32 to vector<3x128xf32>
    %25 = arith.maximumf %24, %23 : vector<3x128xf32>
    %26 = vector.broadcast %cst_11 : f32 to vector<3x128xf32>
    %27 = arith.minimumf %26, %25 : vector<3x128xf32>
    %28 = arith.subf %23, %0 : vector<3x128xf32>
    %cst_12 = arith.constant -9.21034049 : f32
    %cst_13 = arith.constant -1.000050e-04 : f32
    %29 = vector.broadcast %cst_12 : f32 to vector<3x128xf32>
    %30 = arith.maximumf %29, %28 : vector<3x128xf32>
    %31 = vector.broadcast %cst_13 : f32 to vector<3x128xf32>
    %32 = arith.minimumf %31, %30 : vector<3x128xf32>
    %cst_14 = arith.constant 1.000000e+00 : f32
    %33 = vector.broadcast %cst_14 : f32 to vector<3x128xf32>
    %34 = arith.cmpf oeq, %1, %33 : vector<3x128xf32>
    %35 = arith.extui %34 : vector<3x128xi1> to vector<3x128xi32>
    %36 = arith.sitofp %35 : vector<3x128xi32> to vector<3x128xf32>
    %cst_15 = arith.constant 1.000000e+00 : f32
    %37 = vector.broadcast %cst_15 : f32 to vector<3x128xf32>
    %38 = arith.cmpf olt, %1, %37 : vector<3x128xf32>
    %39 = arith.extui %38 : vector<3x128xi1> to vector<3x128xi32>
    %40 = arith.sitofp %39 : vector<3x128xi32> to vector<3x128xf32>
    %cst_16 = arith.constant 1.000000e+00 : f32
    %41 = vector.broadcast %cst_16 : f32 to vector<3x128xf32>
    %42 = arith.subf %41, %1 : vector<3x128xf32>
    %43 = arith.mulf %42, %42 : vector<3x128xf32>
    %44 = arith.mulf %43, %43 : vector<3x128xf32>
    %cst_17 = arith.constant 1.000000e+00 : f32
    %45 = vector.broadcast %cst_17 : f32 to vector<3x128xf32>
    %46 = arith.subf %45, %17 : vector<3x128xf32>
    %47 = arith.mulf %46, %46 : vector<3x128xf32>
    %48 = arith.mulf %27, %47 : vector<3x128xf32>
    %49 = arith.mulf %48, %36 : vector<3x128xf32>
    %50 = arith.mulf %17, %17 : vector<3x128xf32>
    %51 = arith.mulf %32, %50 : vector<3x128xf32>
    %52 = arith.mulf %51, %44 : vector<3x128xf32>
    %53 = arith.mulf %52, %40 : vector<3x128xf32>
    %54 = vector.shape_cast %49 : vector<3x128xf32> to vector<1x3x128xf32>
    %cst_18 = arith.constant dense<0.000000e+00> : vector<1xf32>
    %55 = vector.multi_reduction <add>, %54, %cst_18 [1, 2] : vector<1x3x128xf32> to vector<1xf32>
    %56 = vector.shape_cast %55 : vector<1xf32> to vector<1x1x1xf32>
    %57 = vector.extract %56[0, 0, 0] : f32 from vector<1x1x1xf32>
    %c0_19 = arith.constant 0 : index
    %58 = memref.load %arg5[%c0_19] : memref<9xf32, #tpu.memory_space<smem>>
    memref.store %57, %arg5[%c0_19] : memref<9xf32, #tpu.memory_space<smem>>
    %59 = vector.shape_cast %53 : vector<3x128xf32> to vector<1x3x128xf32>
    %cst_20 = arith.constant dense<0.000000e+00> : vector<1xf32>
    %60 = vector.multi_reduction <add>, %59, %cst_20 [1, 2] : vector<1x3x128xf32> to vector<1xf32>
    %61 = vector.shape_cast %60 : vector<1xf32> to vector<1x1x1xf32>
    %62 = vector.extract %61[0, 0, 0] : f32 from vector<1x1x1xf32>
    %c1 = arith.constant 1 : index
    %63 = memref.load %arg5[%c1] : memref<9xf32, #tpu.memory_space<smem>>
    memref.store %62, %arg5[%c1] : memref<9xf32, #tpu.memory_space<smem>>
    %64 = vector.shape_cast %36 : vector<3x128xf32> to vector<1x3x128xf32>
    %cst_21 = arith.constant dense<0.000000e+00> : vector<1xf32>
    %65 = vector.multi_reduction <add>, %64, %cst_21 [1, 2] : vector<1x3x128xf32> to vector<1xf32>
    %66 = vector.shape_cast %65 : vector<1xf32> to vector<1x1x1xf32>
    %67 = vector.extract %66[0, 0, 0] : f32 from vector<1x1x1xf32>
    %c2 = arith.constant 2 : index
    %68 = memref.load %arg5[%c2] : memref<9xf32, #tpu.memory_space<smem>>
    memref.store %67, %arg5[%c2] : memref<9xf32, #tpu.memory_space<smem>>
    %c0_22 = arith.constant 0 : index
    %c0_23 = arith.constant 0 : index
    %69 = vector.load %arg4[%c0_22, %c0_23] : memref<6x128xf32, #tpu.memory_space<vmem>>, vector<6x128xf32>
    %70 = vector.extract_strided_slice %69 {offsets = [0, 0], sizes = [1, 128], strides = [1, 1]} : vector<6x128xf32> to vector<1x128xf32>
    %71 = vector.extract_strided_slice %69 {offsets = [2, 0], sizes = [1, 128], strides = [1, 1]} : vector<6x128xf32> to vector<1x128xf32>
    %72 = arith.mulf %70, %71 : vector<1x128xf32>
    %73 = vector.extract_strided_slice %69 {offsets = [1, 0], sizes = [1, 128], strides = [1, 1]} : vector<6x128xf32> to vector<1x128xf32>
    %74 = vector.extract_strided_slice %69 {offsets = [2, 0], sizes = [1, 128], strides = [1, 1]} : vector<6x128xf32> to vector<1x128xf32>
    %75 = arith.mulf %73, %74 : vector<1x128xf32>
    %76 = arith.subf %72, %75 : vector<1x128xf32>
    %77 = math.absf %76 : vector<1x128xf32>
    %cst_24 = arith.constant 1.000000e+00 : f32
    %78 = vector.broadcast %cst_24 : f32 to vector<1x128xf32>
    %79 = arith.cmpf olt, %77, %78 : vector<1x128xf32>
    %cst_25 = arith.constant 5.000000e-01 : f32
    %80 = vector.broadcast %cst_25 : f32 to vector<1x128xf32>
    %81 = arith.mulf %80, %76 : vector<1x128xf32>
    %82 = arith.mulf %81, %76 : vector<1x128xf32>
    %cst_26 = arith.constant 5.000000e-01 : f32
    %83 = vector.broadcast %cst_26 : f32 to vector<1x128xf32>
    %84 = arith.subf %77, %83 : vector<1x128xf32>
    %85 = arith.select %79, %82, %84 : vector<1x128xi1>, vector<1x128xf32>
    %86 = vector.shape_cast %85 : vector<1x128xf32> to vector<1x1x128xf32>
    %cst_27 = arith.constant dense<0.000000e+00> : vector<1xf32>
    %87 = vector.multi_reduction <add>, %86, %cst_27 [1, 2] : vector<1x1x128xf32> to vector<1xf32>
    %88 = vector.shape_cast %87 : vector<1xf32> to vector<1x1x1xf32>
    %89 = vector.extract %88[0, 0, 0] : f32 from vector<1x1x1xf32>
    %c3 = arith.constant 3 : index
    %90 = memref.load %arg5[%c3] : memref<9xf32, #tpu.memory_space<smem>>
    memref.store %89, %arg5[%c3] : memref<9xf32, #tpu.memory_space<smem>>
    %91 = vector.extract_strided_slice %69 {offsets = [2, 0], sizes = [1, 128], strides = [1, 1]} : vector<6x128xf32> to vector<1x128xf32>
    %92 = vector.shape_cast %91 : vector<1x128xf32> to vector<1x1x128xf32>
    %cst_28 = arith.constant dense<0.000000e+00> : vector<1xf32>
    %93 = vector.multi_reduction <add>, %92, %cst_28 [1, 2] : vector<1x1x128xf32> to vector<1xf32>
    %94 = vector.shape_cast %93 : vector<1xf32> to vector<1x1x1xf32>
    %95 = vector.extract %94[0, 0, 0] : f32 from vector<1x1x1xf32>
    %c4 = arith.constant 4 : index
    %96 = memref.load %arg5[%c4] : memref<9xf32, #tpu.memory_space<smem>>
    memref.store %95, %arg5[%c4] : memref<9xf32, #tpu.memory_space<smem>>
    %97 = vector.extract_strided_slice %69 {offsets = [3, 0], sizes = [1, 128], strides = [1, 1]} : vector<6x128xf32> to vector<1x128xf32>
    %98 = vector.extract_strided_slice %69 {offsets = [5, 0], sizes = [1, 128], strides = [1, 1]} : vector<6x128xf32> to vector<1x128xf32>
    %99 = arith.mulf %97, %98 : vector<1x128xf32>
    %100 = vector.extract_strided_slice %69 {offsets = [4, 0], sizes = [1, 128], strides = [1, 1]} : vector<6x128xf32> to vector<1x128xf32>
    %101 = vector.extract_strided_slice %69 {offsets = [5, 0], sizes = [1, 128], strides = [1, 1]} : vector<6x128xf32> to vector<1x128xf32>
    %102 = arith.mulf %100, %101 : vector<1x128xf32>
    %103 = arith.subf %99, %102 : vector<1x128xf32>
    %104 = math.absf %103 : vector<1x128xf32>
    %cst_29 = arith.constant 1.000000e+00 : f32
    %105 = vector.broadcast %cst_29 : f32 to vector<1x128xf32>
    %106 = arith.cmpf olt, %104, %105 : vector<1x128xf32>
    %cst_30 = arith.constant 5.000000e-01 : f32
    %107 = vector.broadcast %cst_30 : f32 to vector<1x128xf32>
    %108 = arith.mulf %107, %103 : vector<1x128xf32>
    %109 = arith.mulf %108, %103 : vector<1x128xf32>
    %cst_31 = arith.constant 5.000000e-01 : f32
    %110 = vector.broadcast %cst_31 : f32 to vector<1x128xf32>
    %111 = arith.subf %104, %110 : vector<1x128xf32>
    %112 = arith.select %106, %109, %111 : vector<1x128xi1>, vector<1x128xf32>
    %113 = vector.shape_cast %112 : vector<1x128xf32> to vector<1x1x128xf32>
    %cst_32 = arith.constant dense<0.000000e+00> : vector<1xf32>
    %114 = vector.multi_reduction <add>, %113, %cst_32 [1, 2] : vector<1x1x128xf32> to vector<1xf32>
    %115 = vector.shape_cast %114 : vector<1xf32> to vector<1x1x1xf32>
    %116 = vector.extract %115[0, 0, 0] : f32 from vector<1x1x1xf32>
    %c5 = arith.constant 5 : index
    %117 = memref.load %arg5[%c5] : memref<9xf32, #tpu.memory_space<smem>>
    memref.store %116, %arg5[%c5] : memref<9xf32, #tpu.memory_space<smem>>
    %118 = vector.extract_strided_slice %69 {offsets = [5, 0], sizes = [1, 128], strides = [1, 1]} : vector<6x128xf32> to vector<1x128xf32>
    %119 = vector.shape_cast %118 : vector<1x128xf32> to vector<1x1x128xf32>
    %cst_33 = arith.constant dense<0.000000e+00> : vector<1xf32>
    %120 = vector.multi_reduction <add>, %119, %cst_33 [1, 2] : vector<1x1x128xf32> to vector<1xf32>
    %121 = vector.shape_cast %120 : vector<1xf32> to vector<1x1x1xf32>
    %122 = vector.extract %121[0, 0, 0] : f32 from vector<1x1x1xf32>
    %c6 = arith.constant 6 : index
    %123 = memref.load %arg5[%c6] : memref<9xf32, #tpu.memory_space<smem>>
    memref.store %122, %arg5[%c6] : memref<9xf32, #tpu.memory_space<smem>>
    %c0_34 = arith.constant 0 : index
    %c0_35 = arith.constant 0 : index
    %124 = vector.load %arg2[%c0_34, %c0_35] : memref<24x128xf32, #tpu.memory_space<vmem>>, vector<24x128xf32>
    %c0_36 = arith.constant 0 : index
    %c0_37 = arith.constant 0 : index
    %125 = vector.load %arg3[%c0_36, %c0_37] : memref<8x128xf32, #tpu.memory_space<vmem>>, vector<8x128xf32>
    %126 = tpu.concatenate %125, %125, %125 in 0 : vector<8x128xf32>, vector<8x128xf32>, vector<8x128xf32> -> vector<24x128xf32>
    %127 = arith.subf %124, %126 : vector<24x128xf32>
    %128 = tpu.iota {dimensions = array<i32: 0>} : vector<24x128xi32>
    %cst_38 = arith.constant 7.225000e-01 : f32
    %129 = vector.broadcast %cst_38 : f32 to vector<24x128xf32>
    %c8_i32 = arith.constant 8 : i32
    %130 = vector.broadcast %c8_i32 : i32 to vector<24x128xi32>
    %131 = arith.cmpi sge, %128, %130 : vector<24x128xi32>
    %cst_39 = arith.constant 8.500000e-01 : f32
    %132 = vector.broadcast %cst_39 : f32 to vector<24x128xf32>
    %133 = arith.select %131, %132, %129 : vector<24x128xi1>, vector<24x128xf32>
    %c16_i32 = arith.constant 16 : i32
    %134 = vector.broadcast %c16_i32 : i32 to vector<24x128xi32>
    %135 = arith.cmpi sge, %128, %134 : vector<24x128xi32>
    %cst_40 = arith.constant 1.000000e+00 : f32
    %136 = vector.broadcast %cst_40 : f32 to vector<24x128xf32>
    %137 = arith.select %135, %136, %133 : vector<24x128xi1>, vector<24x128xf32>
    %138 = math.absf %127 : vector<24x128xf32>
    %cst_41 = arith.constant 1.000000e+00 : f32
    %139 = vector.broadcast %cst_41 : f32 to vector<24x128xf32>
    %140 = arith.cmpf olt, %138, %139 : vector<24x128xf32>
    %cst_42 = arith.constant 5.000000e-01 : f32
    %141 = vector.broadcast %cst_42 : f32 to vector<24x128xf32>
    %142 = arith.mulf %141, %127 : vector<24x128xf32>
    %143 = arith.mulf %142, %127 : vector<24x128xf32>
    %cst_43 = arith.constant 5.000000e-01 : f32
    %144 = vector.broadcast %cst_43 : f32 to vector<24x128xf32>
    %145 = arith.subf %138, %144 : vector<24x128xf32>
    %146 = arith.select %140, %143, %145 : vector<24x128xi1>, vector<24x128xf32>
    %147 = arith.mulf %146, %137 : vector<24x128xf32>
    %148 = vector.shape_cast %147 : vector<24x128xf32> to vector<1x24x128xf32>
    %cst_44 = arith.constant dense<0.000000e+00> : vector<1xf32>
    %149 = vector.multi_reduction <add>, %148, %cst_44 [1, 2] : vector<1x24x128xf32> to vector<1xf32>
    %150 = vector.shape_cast %149 : vector<1xf32> to vector<1x1x1xf32>
    %151 = vector.extract %150[0, 0, 0] : f32 from vector<1x1x1xf32>
    %c7 = arith.constant 7 : index
    %152 = memref.load %arg5[%c7] : memref<9xf32, #tpu.memory_space<smem>>
    memref.store %151, %arg5[%c7] : memref<9xf32, #tpu.memory_space<smem>>
    %c127_i32 = arith.constant 127 : i32
    %153 = tpu.dynamic_rotate %127 by %c127_i32 dim 1 : vector<24x128xf32>, i32 -> vector<24x128xf32>
    %154 = arith.subf %153, %127 : vector<24x128xf32>
    %155 = math.absf %154 : vector<24x128xf32>
    %cst_45 = arith.constant 1.000000e+00 : f32
    %156 = vector.broadcast %cst_45 : f32 to vector<24x128xf32>
    %157 = arith.cmpf olt, %155, %156 : vector<24x128xf32>
    %cst_46 = arith.constant 5.000000e-01 : f32
    %158 = vector.broadcast %cst_46 : f32 to vector<24x128xf32>
    %159 = arith.mulf %158, %154 : vector<24x128xf32>
    %160 = arith.mulf %159, %154 : vector<24x128xf32>
    %cst_47 = arith.constant 5.000000e-01 : f32
    %161 = vector.broadcast %cst_47 : f32 to vector<24x128xf32>
    %162 = arith.subf %155, %161 : vector<24x128xf32>
    %163 = arith.select %157, %160, %162 : vector<24x128xi1>, vector<24x128xf32>
    %164 = arith.mulf %163, %137 : vector<24x128xf32>
    %165 = vector.shape_cast %164 : vector<24x128xf32> to vector<1x24x128xf32>
    %cst_48 = arith.constant dense<0.000000e+00> : vector<1xf32>
    %166 = vector.multi_reduction <add>, %165, %cst_48 [1, 2] : vector<1x24x128xf32> to vector<1xf32>
    %167 = vector.shape_cast %166 : vector<1xf32> to vector<1x1x1xf32>
    %168 = vector.extract %167[0, 0, 0] : f32 from vector<1x1x1xf32>
    %c8 = arith.constant 8 : index
    %169 = memref.load %arg5[%c8] : memref<9xf32, #tpu.memory_space<smem>>
    memref.store %168, %arg5[%c8] : memref<9xf32, #tpu.memory_space<smem>>
    return
  }
}

</mosaic_0001>

<bundles_post_ra>
// kernel: network_wrapper_losses.2
= control target key start
LH: loop header
LB: loop body
LE: loop exit
PB: predicated region body
PF: predicated region fallthrough
CT: control target
= control target key end

     0   :  { %11 = vsyncpa [#allocation3], 0  ;;  %s899_s0 = inlined_call_operand.vmem [shape: f32[9], index: 0, kind: input, shape index: {}]   ;;  %s900_s1 = inlined_call_operand.vmem [shape: f32[3], index: 1, kind: input, shape index: {}]   ;;  %s901_s2 = inlined_call_operand.vmem [shape: f32[3,16,128], index: 2, kind: input, shape index: {}]   ;;  %s902_s3 = inlined_call_operand.vmem [shape: f32[16,128], index: 3, kind: input, shape index: {}]   ;;  %s903_s4 = inlined_call_operand.vmem [shape: f32[2,16,128], index: 4, kind: output, shape index: {0}]   ;;  %s904_s5 = inlined_call_operand.vmem [shape: f32[2,3,128], index: 5, kind: output, shape index: {1}]  }
   0x1   :  { %12 = vsyncpa [#allocation5], 0  ;;  %s786_s18 = smov 0   ;;  %s788_s19 = smov 0  }
   0x2   :  { %s790_s20 = smov 0  }
   0x3 LB: > { %s802_s21 = sadd.s32 4294967295, %s751_s20   ;;  %s805_s22 = sadd.s32 1, %s751_s20   ;;  %s751_s20 = sphi %s790_s20, %s910_s20   ;;  %s747_s19 = sphi %s788_s19, %s909_s19   ;;  %s743_s18 = sphi %s786_s18, %s908_s18  }
   0x4   : > { %s64_s23 = ssub.s32 %s751_s20, %s805_s22  ;;  %s67_s24 = sadd.s32 1, %s747_s19 }
   0x5   : > { %p65_p0 = scmp.eq.s32.totalorder %s64_s23, 0  ;;  %p74_p1 = scmp.ne.s32.totalorder %s747_s19, %s743_s18 }
   0x6   : > { %p75_p2 = scmp.eq.s32.totalorder %s751_s20, 0  ;;  %p130_p3 = scmp.eq.s32.totalorder %s802_s21, 1 }
   0x7   : > { %s815_s25 = scalar_select %p65_p0, %s747_s19, %s67_s24  }
   0x8   : > { %p817_p4 = por %p75_p2, %p74_p1  ;;  %p821_p5 = por %p130_p3, %p74_p1 }
   0x9   : > { %p609_p6 = scmp.ge.s32.totalorder %s751_s20, 1  ;;  %p169_p7 = scmp.lt.s32.totalorder %s751_s20, 3 }
   0xa   : > { %p654_p8 = scmp.eq.s32.totalorder %s802_s21, 0  ;;  %s181_s6 = sshll.u32 %s899_s0, 4  ;;  %s182_s6 = int_to_ptr.vmem [resolvable:$true] %s181_s6 }
   0xb   : > { %p828_p9 = pnand %p609_p6, %p169_p7  ;;  %s191_s9 = sshll.u32 %s900_s1, 4  ;;  %s192_s9 = int_to_ptr.vmem [resolvable:$true] %s191_s9 }
   0xc   : > { %s753_s10 = smov [#allocation2]   ;;  %s754_s11 = smov [#allocation4]  }
   0xd   : > { %p647_p10 = pneg %p828_p9  ;;  %p612_p12 = scmp.ge.s32.totalorder %s751_s20, 2 }
   0xf   : > { %p648_p11 = pnand %p654_p8, %p647_p10  ;;  %198 = sbr.rel (%p612_p12) target bundleno = 27 (0x1b), region = 24 }
  0x11   : > { %650 = dma.vmem_to_smem (!%p648_p11), %s182_s6, 16, %s753_s10, [#allocation3]  }
  0x12   : > { %653 = dma.vmem_to_smem (!%p648_p11), %s192_s9, 16, %s754_s11, [#allocation5]  }
  0x14   : > { %201 = sbr.rel (!%p817_p4) target bundleno = 27 (0x1b), region = 28  ;;  %s203_s12 = sand.u32 (%p817_p4), 1, %s747_s19  }
  0x15   : > { %s613_s13 = sshll.u32 (%p817_p4), %s751_s20, 3  ;;  %s637_s14 = smul.u32 (%p817_p4), 24, %s203_s12 }
  0x16   : > { %s207_s17 = scalar_lea.vmem (%p817_p4), %s901_s2, %s613_s13 }
  0x17   : > { %v240_v0 = vld [vmem:[%s207_s17] sm:$0xff] (%p817_p4)  ;;  %v242_v1 = vld [vmem:[%s207_s17 + $0x10] sm:$0xff] (%p817_p4)  ;;  %s205_s23 = scalar_lea.vmem (%p817_p4), [#allocation6], %s637_s14 }
  0x18   : > { %v244_v2 = vld [vmem:[%s207_s17 + $0x20] sm:$0xff] (%p817_p4)  ;;  %241 = vst [vmem:[%s205_s23] sm:$0xff] (%p817_p4), %v240_v0 }
  0x19   : > { %243 = vst [vmem:[%s205_s23 + $0x8] sm:$0xff] %v242_v1 }
  0x1a   : > { %245 = vst [vmem:[%s205_s23 + $0x10] sm:$0xff] %v244_v2 }
  0x1b PF: > { %261 = sbr.rel (%p828_p9) target bundleno = 117 (0x75), region = 70 }
  0x20   : > { %734 = dma.done.wait (%p654_p8), [#allocation3], 16  }
  0x21   : > { %736 = vsyncadd (%p654_p8), [#allocation3], 4294967280 }
  0x22   : > { %738 = dma.done.wait (%p654_p8), [#allocation5], 16  }
  0x23   : > { %740 = vsyncadd (%p654_p8), [#allocation5], 4294967280  ;;  %s274_s20 = sand.u32 1, %s743_s18  }
  0x24   : > { %s638_s24 = smul.u32 24, %s274_s20 }
  0x26   : > { %s276_s26 = scalar_lea.vmem [#allocation6], %s638_s24 }
  0x27   : > { %280 = sfence }
  0x28   : > { %s320_s28 = sld [smem:[#allocation2]]  ;;  %v317_v3 = vld [vmem:[%s276_s26] sm:$0xff]  ;;  %v318_v4 = vld [vmem:[%s276_s26 + $0x8] sm:$0xff]  ;;  %v319_v6 = vld [vmem:[%s276_s26 + $0x10] sm:$0xff]  ;;  %s617_s15 = sshll.u32 %s274_s20, 4  ;;  %v755_v63 = vmov 0.0  }
  0x29   : > { %s323_s29 = sld [smem:[#allocation4]]  ;;  %s865_s18 = scalar_lea.vmem [#allocation7], %s617_s15  ;;  %vm435_vm7 = vcmask 1040384   ;;  %vm437_vm8 = vcmask 1041408  }
  0x2a   : > { %s620_s30 = sld [smem:[#allocation2 + $0x3]]  ;;  %p309_p13 = scmp.lt.s32.totalorder %s802_s21, 1 }
  0x2b   : > { %s621_s6 = sld [smem:[#allocation2 + $0x6]] }
  0x2c   : > { %s622_s7 = sld [smem:[#allocation2 + $0x1]] }
  0x2d   : > { %s623_s8 = sld [smem:[#allocation4 + $0x1]] }
  0x2e   : > { %v321_v5 = vstv %s320_s28  ;;  %s624_s9 = sld [smem:[#allocation2 + $0x4]] }
  0x2f   : > { %v322_v7 = vmul.f32 %v321_v5, %v317_v3  ;;  %v324_v8 = vstv %s323_s29  ;;  %s625_s10 = sld [smem:[#allocation2 + $0x7]] }
  0x30   : > { %v327_v9 = vstv %s620_s30  ;;  %s626_s11 = sld [smem:[#allocation2 + $0x2]] }
  0x31   : > { %v325_v10 = vadd.f32 %v324_v8, %v322_v7  ;;  %v328_v11 = vmul.f32 %v327_v9, %v318_v4  ;;  %v331_v12 = vstv %s621_s6  ;;  %s627_s12 = sld [smem:[#allocation4 + $0x2]]  ;;  %s634_s6 = sshll.u32 (%p821_p5), %s802_s21, 3 }
  0x32   : > { %v332_v13 = vmul.f32 %v331_v12, %v319_v6  ;;  %v335_v14 = vstv %s622_s7  ;;  %s628_s13 = sld [smem:[#allocation2 + $0x5]] }
  0x33   : > { %v329_v15 = vadd.f32 %v328_v11, %v325_v10  ;;  %v336_v16 = vmul.f32 %v335_v14, %v317_v3  ;;  %v338_v17 = vstv %s623_s8  ;;  %s629_s14 = sld [smem:[#allocation2 + $0x8]] }
  0x34   : > { %v341_v18 = vstv %s624_s9  ;;  %s871_s16 = scalar_select %p309_p13, %s802_s21, 1 }
  0x35   : > { %v333_v19 = vadd.f32 %v332_v13, %v329_v15  ;;  %v339_v20 = vadd.f32 %v338_v17, %v336_v16  ;;  %v342_v21 = vmul.f32 %v341_v18, %v318_v4  ;;  %v345_v22 = vstv %s625_s10  ;;  %s452_s9 = scalar_lea.vmem (%p821_p5), %s903_s4, %s634_s6 }
  0x36   : > { %v346_v23 = vmul.f32 %v345_v22, %v319_v6  ;;  %v350_v24 = vstv %s626_s11  ;;  %s618_s17 = sshll.u32 %s871_s16, 3  ;;  %s619_s26 = sshll.u32 %s871_s16, 2 }
  0x37   : > { %v343_v25 = vadd.f32 %v342_v21, %v339_v20  ;;  %v366_v26 = vand.u32 2147483647, %v333_v19  ;;  %v351_v27 = vmul.f32 %v350_v24, %v317_v3  ;;  %v353_v28 = vstv %s627_s12  ;;  %s312_s24 = scalar_lea.vmem %s902_s3, %s618_s17  ;;  %s316_s30 = scalar_lea.vmem %s904_s5, %s619_s26 }
  0x38   : > { %v356_v29 = vstv %s628_s13  ;;  %v391_v42 = vmin.f32 %v333_v19, 0.0  ;;  %v365_v52 = vld [vmem:[%s312_s24] sm:$0xff]  ;;  %vm386_vm4 = vcmp.ge.f32.partialorder %v333_v19, 0.0 }
  0x39   : > { %v347_v30 = vadd.f32 %v346_v23, %v343_v25  ;;  %v367_v31 = vsub.f32 0.0, %v366_v26  ;;  %v357_v32 = vmul.f32 %v356_v29, %v318_v4  ;;  %v360_v33 = vstv %s629_s14 }
  0x3a   : > { %v354_v34 = vadd.f32 %v353_v28, %v351_v27  ;;  %v361_v35 = vmul.f32 %v360_v33, %v319_v6  ;;  %v406_v57 = vsub.f32 1.0, %v365_v52  ;;  %vm400_vm5 = vcmp.eq.f32.partialorder %v365_v52, 1.0 }
  0x3b   : > { %348 = vst [vmem:[%s865_s18] sm:$0xff] %v347_v30  ;;  %v368_v36 = vmul.f32 1.442695, %v367_v31  ;;  %v631_v0 = vsel %vm400_vm5, 1.0, %v755_v63  ;;  %vm403_vm6 = vcmp.lt.f32.partialorder %v365_v52, 1.0 }
  0x3c   : > { %v358_v37 = vadd.f32 %v357_v32, %v354_v34  ;;  %v407_v1 = vmul.f32 %v406_v57, %v406_v57  ;;  %v429_v2 = vrot.slane %v631_v0, 4  ;;  %v632_v12 = vsel %vm403_vm6, 1.0, %v755_v63 }
  0x3d   : > { %685 = vpow2.f32 %v368_v36 }
  0x3e   : > { %v362_v38 = vadd.f32 %v361_v35, %v358_v37  ;;  %v408_v6 = vmul.f32 %v407_v1, %v407_v1  ;;  %v430_v9 = vadd.f32 %v631_v0, %v429_v2 }
  0x40   : > { %630 = vst [vmem:[%s865_s18 + $0x8] sm:$0xff] %v362_v38  ;;  %v431_v15 = vrot.slane %v430_v9, 2 }
  0x42   : > { %v432_v20 = vadd.f32 %v431_v15, %v430_v9  ;;  %v483_v35 = vld [vmem:[%s865_s18] sm:$0xff] (%p821_p5) }
  0x43   : > { %v686_v39 = vpop.eup %685  ;;  %484 = vst [vmem:[%s452_s9] sm:$0xff] (%p821_p5), %v483_v35 }
  0x44   : > { %v370_v40 = vadd.f32 1.0, %v686_v39  ;;  %v433_v25 = vrot.slane %v432_v20, 1 }
  0x46   : > { %687 = vrcp.f32 %v370_v40  ;;  %v382_v45 = vand.u32 2147483648, %v370_v40  ;;  %vm376_vm0 = vweird.f32 %v370_v40  ;;  %v380_v48 = vand.u32 2147483647, %v370_v40 }
  0x47   : > { %689 = vlog2.f32 %v370_v40  ;;  %v434_v30 = vadd.f32 %v433_v25, %v432_v20  ;;  %v485_v36 = vld [vmem:[%s865_s18 + $0x8] sm:$0xff] (%p821_p5) }
  0x48   : > { %v383_v51 = vor.u32 1.1754944e-38, %v382_v45  ;;  %vm381_vm3 = vcmp.eq.f32.partialorder %v380_v48, 8.507059e+37  ;;  %486 = vst [vmem:[%s452_s9 + $0x10] sm:$0xff] (%p821_p5), %v485_v36 }
  0x4c   : > { %v688_v41 = vpop.eup %687 }
  0x4d   : > { %v690_v43 = vpop.eup %689  ;;  %v372_v44 = vmul.f32 %v688_v41, %v370_v40  ;;  %vm377_vm1 = vweird.f32 %v688_v41 }
  0x4e   : > { %v393_v46 = vmul.f32 0.6931472, %v690_v43  ;;  %vm378_vm2 = vmor %vm376_vm0, %vm377_vm1 }
  0x4f   : > { %v373_v47 = vsub.f32 1.0, %v372_v44 }
  0x50   : > { %v394_v49 = vsub.f32 %v391_v42, %v393_v46 }
  0x51   : > { %v374_v50 = vmul.f32 %v688_v41, %v373_v47 }
  0x52   : > { %v397_v54 = vsub.f32 %v394_v49, %v333_v19  ;;  %v395_v62 = vmax.f32 %v394_v49, -9.2103405 }
  0x53   : > { %v375_v53 = vadd.f32 %v688_v41, %v374_v50 }
  0x54   : > { %v398_v59 = vmax.f32 %v397_v54, -9.2103405  ;;  %v396_v5 = vmin.f32 %v395_v62, -0.000100005 }
  0x55   : > { %v379_v55 = vsel %vm378_vm2, %v688_v41, %v375_v53 }
  0x56   : > { %v384_v56 = vsel %vm381_vm3, %v383_v51, %v379_v55  ;;  %v399_v4 = vmin.f32 %v398_v59, -0.000100005 }
  0x57   : > { %v387_v58 = vmul.f32 %v686_v39, %v384_v56 }
  0x59   : > { %v388_v60 = vsel %vm386_vm4, %v384_v56, %v387_v58 }
  0x5a   : > { %v389_v61 = vmax.f32 %v388_v60, 0.0001 }
  0x5c   : > { %v390_v3 = vmin.f32 %v389_v61, 0.9999 }
  0x5e   : > { %v409_v7 = vsub.f32 1.0, %v390_v3  ;;  %v413_v8 = vmul.f32 %v390_v3, %v390_v3 }
  0x60   : > { %v410_v10 = vmul.f32 %v409_v7, %v409_v7  ;;  %v414_v11 = vmul.f32 %v413_v8, %v399_v4 }
  0x62   : > { %v411_v13 = vmul.f32 %v410_v10, %v396_v5  ;;  %v415_v14 = vmul.f32 %v414_v11, %v408_v6 }
  0x64   : > { %v412_v16 = vmul.f32 %v631_v0, %v411_v13  ;;  %v416_v17 = vmul.f32 %v632_v12, %v415_v14 }
  0x66   : > { %v417_v18 = vrot.slane %v412_v16, 4  ;;  %v423_v19 = vrot.slane %v416_v17, 4 }
  0x68   : > { %v418_v21 = vadd.f32 %v417_v18, %v412_v16  ;;  %v424_v22 = vadd.f32 %v423_v19, %v416_v17 }
  0x6a   : > { %v419_v23 = vrot.slane %v418_v21, 2  ;;  %v425_v24 = vrot.slane %v424_v22, 2 }
  0x6c   : > { %v420_v26 = vadd.f32 %v419_v23, %v418_v21  ;;  %v426_v27 = vadd.f32 %v425_v24, %v424_v22 }
  0x6e   : > { %v421_v28 = vrot.slane %v420_v26, 1  ;;  %v427_v29 = vrot.slane %v426_v27, 1 }
  0x70   : > { %v422_v31 = vadd.f32 %v421_v28, %v420_v26  ;;  %v428_v32 = vadd.f32 %v427_v29, %v426_v27  ;;  %450 = sbr.rel (!%p821_p5) target bundleno = 117 (0x75), region = 86 }
  0x72   : > { %v436_v33 = vsel %vm435_vm7, %v422_v31, %v428_v32 }
  0x73   : > { %v438_v34 = vsel %vm437_vm8, %v436_v33, %v434_v30 }
  0x74   : > { %439 = vst [vmem:[%s316_s30] sm:$0x7] %v438_v34 }
  0x75 PF: > { %p15_p0 = scmp.ge.s32.totalorder %s805_s22, 4   ;;  %s908_s18 = smov %s747_s19 }
  0x76   : > { %s909_s19 = smov %s815_s25  ;;  %s910_s20 = smov %s805_s22 }
  0x77   :  { %17 = sbr.rel (!%p15_p0) target bundleno = 3 (0x3), region = 172 }
  0x7c   :  { %512 = vsyncpa [#allocation3], 1 }
  0x7d   :  { %514 = vsyncpa [#allocation3 + $0x1], 1 }
  0x7e   :  { %515 = vsyncpa [#allocation5], 1 }

// kernel: network_wrapper_losses.3
= control target key start
LH: loop header
LB: loop body
LE: loop exit
PB: predicated region body
PF: predicated region fallthrough
CT: control target
= control target key end

     0   :  { %vm74_vm0 = vcmask 1042432   ;;  %s463_s0 = inlined_call_operand.vmem [shape: f32[3,128], index: 0, kind: input, shape index: {}]   ;;  %s464_s1 = inlined_call_operand.vmem [shape: f32[3,128], index: 1, kind: input, shape index: {}]   ;;  %s465_s2 = inlined_call_operand.vmem [shape: f32[24,128], index: 2, kind: input, shape index: {}]   ;;  %s466_s3 = inlined_call_operand.vmem [shape: f32[8,128], index: 3, kind: input, shape index: {}]   ;;  %s467_s4 = inlined_call_operand.vmem [shape: f32[6,128], index: 4, kind: input, shape index: {}]   ;;  %s468_s5 = inlined_call_operand.vmem [shape: f32[9], index: 5, kind: output, shape index: {}]  }
   0x1   :  { %v183_v0 = vld [vmem:[%s465_s2] sm:$0xff]  ;;  %v185_v3 = vld [vmem:[%s465_s2 + $0x10] sm:$0xff] }
   0x2   :  { %v186_v1 = vld [vmem:[%s466_s3] sm:$0xff] }
   0x3   :  { %v387_v2 = vsub.f32 %v183_v0, %v186_v1  ;;  %v395_v4 = vld [vmem:[%s464_s1] sm:$0x7]  ;;  %v402_v6 = vsub.f32 %v185_v3, %v186_v1 }
   0x4   :  { %v400_v5 = vld [vmem:[%s463_s0] sm:$0x7]  ;;  %vm57_vm1 = vcmp.eq.f32.partialorder %v395_v4, 1.0 }
   0x5   :  { %10 = vsyncpa [#allocation3], 0  ;;  %s348_s3 = smov 127   ;;  %v349_v7 = vmov 0.0   ;;  %v23_v9 = vand.u32 2147483647, %v400_v5 }
   0x6   :  { %240 = vrot.lane.b32.xlu0 %v387_v2, %s348_s3  ;;  %v407_v8 = vsel %vm57_vm1, 1.0, %v349_v7  ;;  %v184_v10 = vld [vmem:[%s465_s2 + $0x8] sm:$0xff]  ;;  %244 = vrot.lane.b32.xlu1 %v402_v6, %s348_s3  ;;  %v111_v15 = vld [vmem:[%s467_s4] sm:$0x3f]  ;;  %vm129_vm2 = vcmask 1040384   ;;  %v212_v29 = vmul.f32 0.5, %v387_v2 }
   0x7   :  { %v99_v11 = vsel %vm74_vm0, %v407_v8, 0.0  ;;  %v24_v12 = vsub.f32 0.0, %v23_v9  ;;  %v416_v13 = vsub.f32 %v184_v10, %v186_v1  ;;  %v116_v16 = vrot.slane %v111_v15, 1  ;;  %s288_s13 = sshll.u32 %s468_s5, 4  ;;  %s350_s15 = smov [#allocation2]   ;;  %s289_s13 = int_to_ptr.vmem [resolvable:$true] %s288_s13 }
   0x8   :  { %100 = vadd.xlane.f32.xlu2 %v99_v11  ;;  %v113_v18 = vrot.slane %v111_v15, 2  ;;  %v206_v25 = vand.u32 2147483647, %v387_v2  ;;  %v48_v36 = vmin.f32 %v400_v5, 0.0  ;;  %v215_v44 = vmul.f32 %v212_v29, %v387_v2 }
   0x9   :  { %v25_v14 = vmul.f32 1.442695, %v24_v12  ;;  %v118_v19 = vmul.f32 %v116_v16, %v111_v15  ;;  %v207_v28 = vand.u32 2147483647, %v416_v13  ;;  %v213_v30 = vmul.f32 0.5, %v416_v13 }
   0xa   :  { %v115_v21 = vmul.f32 %v113_v18, %v111_v15  ;;  %v142_v23 = vsel %vm129_vm2, %v113_v18, 0.0  ;;  %v301_v40 = vadd.f32 -0.5, %v206_v25  ;;  %vm430_vm6 = vcmp.lt.f32.partialorder %v206_v25, 1.0 }
   0xb   :  { %328 = vpow2.f32 %v25_v14  ;;  %v120_v22 = vrot.slane %v118_v19, 1  ;;  %v302_v41 = vadd.f32 -0.5, %v207_v28  ;;  %v216_v45 = vmul.f32 %v213_v30, %v416_v13 }
   0xc   :  { %vm434_vm7 = vcmp.lt.f32.partialorder %v207_v28, 1.0  ;;  %v169_v52 = vrot.slane %v111_v15, 5  ;;  %v208_v53 = vand.u32 2147483647, %v402_v6  ;;  %v214_v55 = vmul.f32 0.5, %v402_v6 }
   0xd   :  { %v122_v24 = vsub.f32 %v115_v21, %v120_v22  ;;  %v221_v56 = vsel %vm430_vm6, %v215_v44, %v301_v40  ;;  %v222_v57 = vsel %vm434_vm7, %v216_v45, %v302_v41  ;;  %v63_v59 = vsub.f32 1.0, %v395_v4 }
   0xe   :  { %242 = vrot.lane.b32.xlu0 %v416_v13, %s348_s3  ;;  %vm43_vm10 = vcmp.ge.f32.partialorder %v400_v5, 0.0  ;;  %v224_v62 = vmul.f32 0.7225, %v221_v56  ;;  %v225_v63 = vmul.f32 0.85, %v222_v57  ;;  %v171_v1 = vsel %vm129_vm2, %v169_v52, 0.0 }
   0xf   :  { %v123_v26 = vand.u32 2147483647, %v122_v24  ;;  %v125_v27 = vmul.f32 0.5, %v122_v24  ;;  %v217_v3 = vmul.f32 %v214_v55, %v402_v6  ;;  %v303_v9 = vadd.f32 -0.5, %v208_v53 }
  0x10   :  { %143 = vadd.xlane.f32.xlu2 %v142_v23  ;;  %vm211_vm11 = vcmp.lt.f32.partialorder %v208_v53, 1.0  ;;  %v227_v14 = vadd.f32 %v225_v63, %v224_v62  ;;  %v64_v15 = vmul.f32 %v63_v59, %v63_v59  ;;  %vm60_vm12 = vcmp.lt.f32.partialorder %v395_v4, 1.0 }
  0x11   :  { %v329_v17 = vpop.eup %328  ;;  %vm124_vm3 = vcmp.lt.f32.partialorder %v123_v26, 1.0  ;;  %v126_v31 = vmul.f32 %v125_v27, %v122_v24  ;;  %v300_v32 = vadd.f32 -0.5, %v123_v26  ;;  %v223_v19 = vsel %vm211_vm11, %v217_v3, %v303_v9 }
  0x12   :  { %v27_v20 = vadd.f32 1.0, %v329_v17  ;;  %v228_v21 = vadd.f32 %v227_v14, %v223_v19  ;;  %v65_v24 = vmul.f32 %v64_v15, %v64_v15  ;;  %v299_v27 = vsel %vm60_vm12, 1.0, %v349_v7 }
  0x13   :  { %v128_v39 = vsel %vm124_vm3, %v126_v31, %v300_v32 }
  0x14   :  { %330 = vrcp.f32 %v27_v20  ;;  %vm33_vm4 = vweird.f32 %v27_v20  ;;  %v37_v34 = vand.u32 2147483647, %v27_v20  ;;  %v39_v35 = vand.u32 2147483648, %v27_v20 }
  0x15   :  { %332 = vlog2.f32 %v27_v20  ;;  %v155_v43 = vrot.slane %v128_v39, 3  ;;  %v130_v4 = vsel %vm129_vm2, %v128_v39, 0.0 }
  0x16   :  { %v40_v54 = vor.u32 1.1754944e-38, %v39_v35  ;;  %vm38_vm9 = vcmp.eq.f32.partialorder %v37_v34, 8.507059e+37 }
  0x17   :  { %v157_v50 = vsel %vm129_vm2, %v155_v43, 0.0 }
  0x18   :  { %158 = vadd.xlane.f32.xlu2 %v157_v50 }
  0x1a   :  { %v331_v33 = vpop.eup %330 }
  0x1b   :  { %v333_v37 = vpop.eup %332  ;;  %v29_v38 = vmul.f32 %v331_v33, %v27_v20  ;;  %vm34_vm5 = vweird.f32 %v331_v33 }
  0x1c   :  { %v50_v42 = vmul.f32 0.6931472, %v333_v37  ;;  %vm35_vm8 = vmor %vm33_vm4, %vm34_vm5 }
  0x1d   :  { %v30_v46 = vsub.f32 1.0, %v29_v38 }
  0x1e   :  { %v51_v49 = vsub.f32 %v48_v36, %v50_v42 }
  0x1f   :  { %v31_v51 = vmul.f32 %v331_v33, %v30_v46 }
  0x20   :  { %v54_v60 = vsub.f32 %v51_v49, %v400_v5  ;;  %172 = vadd.xlane.f32.xlu2 %v171_v1  ;;  %v52_v18 = vmax.f32 %v51_v49, -9.2103405 }
  0x21   :  { %v32_v58 = vadd.f32 %v331_v33, %v31_v51 }
  0x22   :  { %v55_v11 = vmax.f32 %v54_v60, -9.2103405  ;;  %v53_v22 = vmin.f32 %v52_v18, -0.000100005 }
  0x23   :  { %v36_v61 = vsel %vm35_vm8, %v331_v33, %v32_v58 }
  0x24   :  { %v41_v0 = vsel %vm38_vm9, %v40_v54, %v36_v61  ;;  %v56_v5 = vmin.f32 %v55_v11, -0.000100005 }
  0x25   :  { %v44_v10 = vmul.f32 %v329_v17, %v41_v0 }
  0x27   :  { %v45_v12 = vsel %vm43_vm10, %v41_v0, %v44_v10 }
  0x28   :  { %v46_v16 = vmax.f32 %v45_v12, 0.0001  ;;  %229 = vadd.xlane.f32.xlu2 %v228_v21 }
  0x2a   :  { %v47_v20 = vmin.f32 %v46_v16, 0.9999 }
  0x2c   :  { %v66_v23 = vsub.f32 1.0, %v47_v20  ;;  %v70_v25 = vmul.f32 %v47_v20, %v47_v20 }
  0x2e   :  { %v67_v26 = vmul.f32 %v66_v23, %v66_v23  ;;  %v71_v17 = vmul.f32 %v70_v25, %v56_v5 }
  0x30   :  { %v68_v28 = vmul.f32 %v67_v26, %v53_v22  ;;  %v72_v29 = vmul.f32 %v71_v17, %v65_v24 }
  0x32   :  { %v69_v30 = vmul.f32 %v407_v8, %v68_v28  ;;  %v73_v31 = vmul.f32 %v299_v27, %v72_v29 }
  0x34   :  { %v87_v32 = vsel %vm74_vm0, %v73_v31, 0.0  ;;  %v75_v33 = vsel %vm74_vm0, %v69_v30, 0.0 }
  0x35   :  { %76 = vadd.xlane.f32.xlu1 %v75_v33  ;;  %88 = vadd.xlane.f32.xlu2 %v87_v32 }
  0x38   :  { %131 = vadd.xlane.f32.xlu0 %v130_v4 }
  0x78   :  { %v241_v34 = vpop.permute.xlu0 %240  ;;  %v245_v36 = vpop.permute.xlu1 %244 }
  0x79   :  { %v246_v35 = vsub.f32 %v241_v34, %v387_v2  ;;  %v248_v38 = vsub.f32 %v245_v36, %v402_v6 }
  0x7b   :  { %v249_v7 = vand.u32 2147483647, %v246_v35  ;;  %v255_v37 = vmul.f32 0.5, %v246_v35  ;;  %v101_v40 = vpop.xlane.xlu2 %100  ;;  %v251_v45 = vand.u32 2147483647, %v248_v38  ;;  %v257_v46 = vmul.f32 0.5, %v248_v38 }
  0x7c   :  { %v102_v58 = vrot.slane %v101_v40, 4 }
  0x7d   :  { %v258_v41 = vmul.f32 %v255_v37, %v246_v35  ;;  %v304_v42 = vadd.f32 -0.5, %v249_v7  ;;  %vm252_vm13 = vcmp.lt.f32.partialorder %v249_v7, 1.0  ;;  %v260_v49 = vmul.f32 %v257_v46, %v248_v38 }
  0x7e   :  { %v306_v50 = vadd.f32 -0.5, %v251_v45  ;;  %vm254_vm15 = vcmp.lt.f32.partialorder %v251_v45, 1.0  ;;  %v103_v62 = vadd.f32 %v102_v58, %v101_v40 }
  0x7f   :  { %v264_v2 = vsel %vm252_vm13, %v258_v41, %v304_v42 }
  0x80   :  { %v243_v8 = vpop.permute.xlu0 %242  ;;  %v267_v6 = vmul.f32 0.7225, %v264_v2  ;;  %v266_v55 = vsel %vm254_vm15, %v260_v49, %v306_v50  ;;  %v104_v9 = vrot.slane %v103_v62, 2 }
  0x81   :  { %v247_v43 = vsub.f32 %v243_v8, %v416_v13 }
  0x82   :  { %v105_v23 = vadd.f32 %v104_v9, %v103_v62 }
  0x83   :  { %v250_v44 = vand.u32 2147483647, %v247_v43  ;;  %v256_v39 = vmul.f32 0.5, %v247_v43  ;;  %v144_v53 = vpop.xlane.xlu2 %143 }
  0x84   :  { %v145_v59 = vrot.slane %v144_v53, 4  ;;  %v106_v32 = vrot.slane %v105_v23, 1 }
  0x85   :  { %vm253_vm14 = vcmp.lt.f32.partialorder %v250_v44, 1.0  ;;  %v259_v47 = vmul.f32 %v256_v39, %v247_v43  ;;  %v305_v48 = vadd.f32 -0.5, %v250_v44 }
  0x86   :  { %v146_v1 = vadd.f32 %v145_v59, %v144_v53  ;;  %v107_v41 = vadd.f32 %v106_v32, %v105_v23 }
  0x87   :  { %v265_v51 = vsel %vm253_vm14, %v259_v47, %v305_v48 }
  0x88   :  { %v268_v52 = vmul.f32 0.85, %v265_v51  ;;  %v147_v15 = vrot.slane %v146_v1, 2 }
  0x8a   :  { %v270_v54 = vadd.f32 %v268_v52, %v267_v6  ;;  %v148_v27 = vadd.f32 %v147_v15, %v146_v1 }
  0x8b   :  { %v159_v13 = vpop.xlane.xlu2 %158 }
  0x8c   :  { %v271_v56 = vadd.f32 %v270_v54, %v266_v55  ;;  %v160_v61 = vrot.slane %v159_v13, 4  ;;  %v149_v7 = vrot.slane %v148_v27, 1 }
  0x8e   :  { %272 = vadd.xlane.f32.xlu2 %v271_v56  ;;  %v161_v3 = vadd.f32 %v160_v61, %v159_v13  ;;  %v150_v45 = vadd.f32 %v149_v7, %v148_v27 }
  0x90   :  { %v162_v19 = vrot.slane %v161_v3, 2 }
  0x92   :  { %v163_v31 = vadd.f32 %v162_v19, %v161_v3 }
  0x93   :  { %v173_v57 = vpop.xlane.xlu2 %172 }
  0x94   :  { %v174_v63 = vrot.slane %v173_v57, 4  ;;  %v164_v8 = vrot.slane %v163_v31, 1 }
  0x96   :  { %v175_v10 = vadd.f32 %v174_v63, %v173_v57  ;;  %v165_v46 = vadd.f32 %v164_v8, %v163_v31 }
  0x98   :  { %v176_v22 = vrot.slane %v175_v10, 2 }
  0x9a   :  { %v177_v33 = vadd.f32 %v176_v22, %v175_v10 }
  0x9b   :  { %v230_v60 = vpop.xlane.xlu2 %229 }
  0x9c   :  { %v231_v0 = vrot.slane %v230_v60, 4  ;;  %v178_v42 = vrot.slane %v177_v33, 1 }
  0x9e   :  { %v232_v12 = vadd.f32 %v231_v0, %v230_v60  ;;  %v179_v47 = vadd.f32 %v178_v42, %v177_v33 }
  0xa0   :  { %v233_v24 = vrot.slane %v232_v12, 2 }
  0xa2   :  { %v234_v36 = vadd.f32 %v233_v24, %v232_v12 }
  0xa4   :  { %v235_v39 = vrot.slane %v234_v36, 1 }
  0xa6   :  { %v236_v48 = vadd.f32 %v235_v39, %v234_v36 }
  0xa8   :  { %v77_v11 = vpop.xlane.xlu1 %76  ;;  %v89_v16 = vpop.xlane.xlu2 %88 }
  0xa9   :  { %v78_v14 = vrot.slane %v77_v11, 4  ;;  %v90_v20 = vrot.slane %v89_v16, 4 }
  0xab   :  { %v132_v18 = vpop.xlane.xlu0 %131  ;;  %v79_v5 = vadd.f32 %v78_v14, %v77_v11  ;;  %v91_v25 = vadd.f32 %v90_v20, %v89_v16 }
  0xac   :  { %v133_v21 = vrot.slane %v132_v18, 4 }
  0xad   :  { %v80_v26 = vrot.slane %v79_v5, 2  ;;  %v92_v28 = vrot.slane %v91_v25, 2 }
  0xae   :  { %v134_v17 = vadd.f32 %v133_v21, %v132_v18 }
  0xaf   :  { %v81_v30 = vadd.f32 %v80_v26, %v79_v5  ;;  %v93_v35 = vadd.f32 %v92_v28, %v91_v25 }
  0xb0   :  { %v135_v29 = vrot.slane %v134_v17, 2 }
  0xb1   :  { %v82_v34 = vrot.slane %v81_v30, 1  ;;  %v94_v38 = vrot.slane %v93_v35, 1 }
  0xb2   :  { %v136_v4 = vadd.f32 %v135_v29, %v134_v17 }
  0xb3   :  { %v83_v37 = vadd.f32 %v82_v34, %v81_v30  ;;  %v95_v43 = vadd.f32 %v94_v38, %v93_v35 }
  0xb4   :  { %v137_v40 = vrot.slane %v136_v4, 1 }
  0xb5   :  { %307 = vpush %v83_v37 }
  0xb6   :  { %v138_v44 = vadd.f32 %v137_v40, %v136_v4  ;;  %309 = vpush %v95_v43 }
  0xb7   :  { %311 = vpush %v107_v41 }
  0xb8   :  { %313 = vpush %v138_v44 }
  0xb9   :  { %315 = vpush %v150_v45 }
  0xba   :  { %317 = vpush %v165_v46 }
  0xbb   :  { %319 = vpush %v179_v47 }
  0xbc   :  { %321 = vpush %v236_v48 }
  0xe6   :  { %s308_s2 = spop %307 }
  0xe7   :  { %86 = sst [smem:[#allocation2]] %s308_s2  ;;  %s310_s4 = spop %309 }
  0xe8   :  { %98 = sst [smem:[#allocation2 + $0x1]] %s310_s4  ;;  %s312_s30 = spop %311 }
  0xe9   :  { %110 = sst [smem:[#allocation2 + $0x2]] %s312_s30  ;;  %s314_s6 = spop %313 }
  0xea   :  { %141 = sst [smem:[#allocation2 + $0x3]] %s314_s6  ;;  %s316_s7 = spop %315 }
  0xeb   :  { %153 = sst [smem:[#allocation2 + $0x4]] %s316_s7  ;;  %s318_s8 = spop %317 }
  0xec   :  { %168 = sst [smem:[#allocation2 + $0x5]] %s318_s8  ;;  %s320_s9 = spop %319 }
  0xed   :  { %182 = sst [smem:[#allocation2 + $0x6]] %s320_s9  ;;  %s322_s10 = spop %321 }
  0xee   :  { %239 = sst [smem:[#allocation2 + $0x7]] %s322_s10 }
 0x101   :  { %v273_v2 = vpop.xlane.xlu2 %272 }
 0x102   :  { %v274_v49 = vrot.slane %v273_v2, 4 }
 0x104   :  { %v275_v50 = vadd.f32 %v274_v49, %v273_v2 }
 0x106   :  { %v276_v51 = vrot.slane %v275_v50, 2 }
 0x108   :  { %v277_v6 = vadd.f32 %v276_v51, %v275_v50 }
 0x10a   :  { %v278_v52 = vrot.slane %v277_v6, 1 }
 0x10c   :  { %v279_v53 = vadd.f32 %v278_v52, %v277_v6 }
 0x10e   :  { %323 = vpush %v279_v53 }
 0x13f   :  { %s324_s14 = spop %323 }
 0x140   :  { %282 = sst [smem:[#allocation2 + $0x8]] %s324_s14 }
 0x141   :  { %291 = dma.smem_to_vmem %s350_s15, 16, %s289_s13, [#allocation3]  }
 0x142   :  { %346 = dma.done.wait [#allocation3], 16  }
 0x143   :  { %347 = vsyncadd [#allocation3], 4294967280 }
 0x144   :  { %296 = sfence }
 0x145   :  { %297 = vsyncpa [#allocation3], 1 }

</bundles_post_ra>
